<compile_context>
chip_gen: v7x
topology: tpu7x:2x2x1
jax: 0.10.0
libtpu: 0.0.40
codegen_flags: <defaults>
</compile_context>

<pallas_src>
import functools
import math

import jax
import jax.numpy as jnp
from jax.experimental import pallas as pl
from jax.experimental.pallas import tpu as pltpu


# ----------------------------- small helpers -------------------------------

def _round_up(x, m):
    return (x + m - 1) // m * m


def _cdiv(a, b):
    return -(-a // b)


def _vmem_capacity_bytes():
    """Per-core VMEM capacity; conservative (v7x, 64 MiB) if the query fails."""
    try:
        return int(pltpu.get_tpu_info().vmem_capacity_bytes)
    except Exception:
        return 64 * 1024 * 1024


def _vpu_has_bf16():
    """True on v6e/v7x (bf16 VALU); False on v5e and older chips."""
    try:
        kind = jax.devices()[0].device_kind.lower()
    except Exception:
        return False
    return not any(tag in kind for tag in ("v2", "v3", "v4", "v5"))


# ----------------------------- fused MLP kernel ----------------------------

def _mlp_fused_kernel(*refs, num_layers, sigmoid_output, relu_in_bf16):
    """Fused MLP forward on one (TM, .) row tile.

    refs layout: x, w_0..w_{L-1}, b_0..b_{L-1}, out
      x   : (TM, D_in)        input dtype (cast to bf16 in VMEM)
      w_l : (K_l, P_{l+1})    bf16, zero-padded on the output dim (and on the
                              input dim for l > 0)
      b_l : (1, P_{l+1})      f32, zero-padded
      out : (TM, P_out)       f32
    """
    x_ref = refs[0]
    w_refs = refs[1:1 + num_layers]
    b_refs = refs[1 + num_layers:1 + 2 * num_layers]
    o_ref = refs[1 + 2 * num_layers]

    h = x_ref[...].astype(jnp.bfloat16)            # cast in VMEM, no HBM pre-pass
    for l in range(num_layers):
        # bf16 x bf16 -> f32 accumulation on the MXU.
        y = jnp.dot(h, w_refs[l][...], preferred_element_type=jnp.float32)
        y = y + b_refs[l][...]                     # f32 bias epilogue (VPU)
        if l < num_layers - 1:
            if relu_in_bf16:
                h = jnp.maximum(y.astype(jnp.bfloat16), 0.0)   # bf16 VPU (v6e/v7x)
            else:
                h = jnp.maximum(y, 0.0).astype(jnp.bfloat16)   # f32 VPU (v5e)
        else:
            if sigmoid_output:
                y = jax.nn.sigmoid(y)              # EUP, f32
            o_ref[...] = y.astype(o_ref.dtype)


def _mlp_fused(x2d, weights_p, biases_p, *, out_dim, sigmoid_output,
               block_rows, budget, resident, per_row, single_buffer_weights):
    n, d_in = x2d.shape
    num_layers = len(weights_p)
    p_out = weights_p[-1].shape[1]

    # ---- row tile selection -------------------------------------------------
    if n < 8:
        tm = n                                         # full-dim block, 1 step
    else:
        n_floor8 = (n // 8) * 8
        tm = min(block_rows, _round_up(n, 16))         # bf16 packs 16 rows/vreg
        if n >= 64:
            # Guarantee >=2 grid steps so both v7x TensorCores get work.
            tm = min(tm, _round_up(_cdiv(n, 2), 16))
        while tm > 16 and resident + tm * per_row > budget:
            tm = _round_up(tm // 2, 16)
        tm = max(8, (min(tm, n_floor8) // 8) * 8)
    grid = (_cdiv(n, tm),)

    est = resident + tm * per_row
    vmem_limit = int(min(budget, max(32 * 1024 * 1024, int(est * 1.3))))

    def _resident_spec(shape):
        # Grid-invariant operand: DMA'd once; single-buffer to halve its VMEM.
        if single_buffer_weights:
            return pl.BlockSpec(shape, lambda i: (0, 0),
                                pipeline_mode=pl.Buffered(1))
        return pl.BlockSpec(shape, lambda i: (0, 0))

    in_specs = [pl.BlockSpec((tm, d_in), lambda i: (i, 0))]
    in_specs += [_resident_spec(w.shape) for w in weights_p]
    in_specs += [_resident_spec(b.shape) for b in biases_p]
    out_spec = pl.BlockSpec((tm, p_out), lambda i: (i, 0))

    kernel = functools.partial(_mlp_fused_kernel, num_layers=num_layers,
                               sigmoid_output=sigmoid_output,
                               relu_in_bf16=_vpu_has_bf16())

    out_p = pl.pallas_call(
        kernel,
        out_shape=jax.ShapeDtypeStruct((n, p_out), jnp.float32),
        grid_spec=pl.GridSpec(grid=grid, in_specs=in_specs, out_specs=out_spec),
        compiler_params=pltpu.CompilerParams(
            dimension_semantics=("parallel",),   # megacore-shardable row axis
            vmem_limit_bytes=vmem_limit,
        ),
    )(x2d, *weights_p, *biases_p)

    return out_p[:, :out_dim]


# --------------------- streaming fallback (large weights) ------------------

def _linear_streamed_kernel(x_ref, w_ref, b_ref, o_ref, acc_ref, *,
                            apply_relu, apply_sigmoid):
    k = pl.program_id(2)

    @pl.when(k == 0)
    def _():
        acc_ref[...] = jnp.zeros_like(acc_ref)

    acc_ref[...] += jnp.dot(x_ref[...].astype(jnp.bfloat16), w_ref[...],
                            preferred_element_type=jnp.float32)

    @pl.when(k == pl.num_programs(2) - 1)
    def _():
        y = acc_ref[...] + b_ref[...]
        if apply_relu:
            y = jnp.maximum(y, 0.0)
        if apply_sigmoid:
            y = jax.nn.sigmoid(y)
        o_ref[...] = y.astype(o_ref.dtype)


def _pick_block(total, target):
    """Largest of (target, total) that divides total; total is 128-aligned."""
    b = min(target, total)
    if total % b:
        b = 128
    return b


def _linear_streamed(x2d, w_p, b_p, *, apply_relu, apply_sigmoid,
                     bm=256, bn=512, bk=512):
    n, kp = x2d.shape
    kp_w, npad = w_p.shape
    assert kp == kp_w
    if n < 8:
        bm = n
    else:
        bm = max(8, (min(bm, (n // 8) * 8) // 8) * 8)
    bn = _pick_block(npad, bn)
    bk = _pick_block(kp, bk)         # K grid must divide exactly (no ragged K)
    grid = (_cdiv(n, bm), npad // bn, kp // bk)

    return pl.pallas_call(
        functools.partial(_linear_streamed_kernel, apply_relu=apply_relu,
                          apply_sigmoid=apply_sigmoid),
        out_shape=jax.ShapeDtypeStruct((n, npad), jnp.float32),
        grid_spec=pl.GridSpec(
            grid=grid,
            in_specs=[pl.BlockSpec((bm, bk), lambda i, j, k: (i, k)),
                      pl.BlockSpec((bk, bn), lambda i, j, k: (k, j)),
                      pl.BlockSpec((1, bn), lambda i, j, k: (0, j))],
            out_specs=pl.BlockSpec((bm, bn), lambda i, j, k: (i, j)),
            scratch_shapes=[pltpu.VMEM((bm, bn), jnp.float32)]),
        compiler_params=pltpu.CompilerParams(
            dimension_semantics=("parallel", "parallel", "arbitrary")),
    )(x2d, w_p, b_p)


def _mlp_streaming(x2d, weights_p, biases_p, *, out_dim, sigmoid_output):
    num_layers = len(weights_p)
    n, d_in = x2d.shape
    # Layer-0: pad x's feature dim and w0's K dim with zeros so K-tiling is
    # exact (padded columns contribute 0).  Later layers are already padded.
    k0 = weights_p[0].shape[0]
    k0p = _round_up(k0, 128)
    h = jnp.zeros((n, k0p), jnp.float32).at[:, :d_in].set(x2d.astype(jnp.float32))
    w0 = jnp.zeros((k0p, weights_p[0].shape[1]), weights_p[0].dtype)
    w0 = w0.at[:k0, :].set(weights_p[0])
    ws = [w0] + list(weights_p[1:])
    for l in range(num_layers):
        is_last = (l == num_layers - 1)
        h = _linear_streamed(h, ws[l], biases_p[l],
                             apply_relu=not is_last,
                             apply_sigmoid=is_last and sigmoid_output)
    return h[:, :out_dim]


# ------------------------------ dispatcher ---------------------------------

def _mlp_forward(x2d, weights_p, biases_p, *, out_dim, sigmoid_output,
                 block_rows=512, force_streaming=False):
    n, d_in = x2d.shape
    if n == 0:
        return jnp.zeros((0, out_dim), jnp.float32)

    cap = _vmem_capacity_bytes()
    budget = int(cap * 0.8)

    resident = (sum(int(w.size) * w.dtype.itemsize for w in weights_p)
                + sum(int(b.size) * b.dtype.itemsize for b in biases_p))
    p_out = weights_p[-1].shape[1]
    p_max = max(w.shape[1] for w in weights_p)
    xb = x2d.dtype.itemsize
    # per-row VMEM: double-buffered x tile + double-buffered f32 out tile +
    # live f32/bf16 intermediate activations.
    per_row = 2 * d_in * xb + 2 * p_out * 4 + 6 * p_max

    fused_fits = resident + 8 * per_row <= budget
    if force_streaming or not fused_fits:
        # Weight set can't stay VMEM-resident (threshold ~2x lower on v7x's
        # 64 MiB than on v5e/v6e's 128 MiB): stream per-layer weight tiles.
        return _mlp_streaming(x2d, weights_p, biases_p, out_dim=out_dim,
                              sigmoid_output=sigmoid_output)

    kwargs = dict(out_dim=out_dim, sigmoid_output=sigmoid_output,
                  block_rows=block_rows, budget=budget, resident=resident,
                  per_row=per_row)
    try:
        return _mlp_fused(x2d, weights_p, biases_p,
                          single_buffer_weights=True, **kwargs)
    except Exception:
        # pl.Buffered(1) pipeline_mode unsupported on this jax/Mosaic build:
        # retry with default double-buffered resident operands.
        return _mlp_fused(x2d, weights_p, biases_p,
                          single_buffer_weights=False, **kwargs)


# ------------------------------ module port --------------------------------

class MLP:
    """JAX/Pallas port of the PyTorch MLP module (fused forward pass).

    Parameters are initialized like nn.Linear: U(-1/sqrt(fan_in), 1/sqrt(fan_in)).
    """

    def __init__(self, input_dim, hidden_dim, output_dim, num_layers,
                 sigmoid_output=False, key=None):
        self.num_layers = num_layers
        self.sigmoid_output = sigmoid_output
        self.output_dim = output_dim
        h = [hidden_dim] * (num_layers - 1)
        dims = list(zip([input_dim] + h, h + [output_dim]))
        if key is None:
            key = jax.random.PRNGKey(0)

        self.weights = []    # f32 (in, out) -- reference math
        self.biases = []     # f32 (out,)    -- reference math
        self.weights_p = []  # bf16; out dim padded to 128; K padded for l > 0
        self.biases_p = []   # f32 (1, P_out), zero-padded
        for li, (n_in, n_out) in enumerate(dims):
            key, wk, bk = jax.random.split(key, 3)
            bound = 1.0 / math.sqrt(n_in)
            w = jax.random.uniform(wk, (n_in, n_out), jnp.float32, -bound, bound)
            b = jax.random.uniform(bk, (n_out,), jnp.float32, -bound, bound)
            self.weights.append(w)
            self.biases.append(b)

            # Layer 0 keeps its K dim unpadded so x can be fed raw (no HBM pad
            # pass); deeper layers' K dims match the previous padded output.
            p_in = n_in if li == 0 else _round_up(n_in, 128)
            p_out = _round_up(n_out, 128)
            w_p = jnp.zeros((p_in, p_out), jnp.bfloat16)
            w_p = w_p.at[:n_in, :n_out].set(w.astype(jnp.bfloat16))
            b_p = jnp.zeros((1, p_out), jnp.float32)
            b_p = b_p.at[0, :n_out].set(b)
            self.weights_p.append(w_p)
            self.biases_p.append(b_p)

    def __call__(self, x, force_streaming=False):
        lead = x.shape[:-1]
        x2d = x.reshape(-1, x.shape[-1])
        out = _mlp_forward(x2d, self.weights_p, self.biases_p,
                           out_dim=self.output_dim,
                           sigmoid_output=self.sigmoid_output,
                           force_streaming=force_streaming)
        return out.reshape(*lead, self.output_dim)

    def reference(self, x):
        """Pure-jnp f32 reference matching the PyTorch forward."""
        for i, (w, b) in enumerate(zip(self.weights, self.biases)):
            x = x @ w + b
            if i < self.num_layers - 1:
                x = jnp.maximum(x, 0.0)
        if self.sigmoid_output:
            x = jax.nn.sigmoid(x)
        return x


# TODO(synk): if exact f32 parity with PyTorch is required, add an f32-weight
# MXU path (reduced throughput) instead of bf16 weights.

if __name__ == "__main__":
    key = jax.random.PRNGKey(0)
    k_param, k_param2, k_x = jax.random.split(key, 3)

    input_dim, hidden_dim, output_dim, num_layers = 32, 32, 16, 3
    batch = 8

    x = jax.random.normal(k_x, (batch, input_dim), jnp.float32)

    # ReLU-only MLP (sigmoid_output=False, the module default).
    mlp = MLP(input_dim, hidden_dim, output_dim, num_layers,
              sigmoid_output=False, key=k_param)
    out = jax.block_until_ready(mlp(x))
    ref = mlp.reference(x)
    assert out.shape == (batch, output_dim)
    err = float(jnp.max(jnp.abs(out - ref)))
    # bf16 matmul inputs (f32 accumulation) vs pure-f32 reference -> loose tol.
    assert jnp.allclose(out, ref, atol=3e-2, rtol=3e-2), f"mismatch max|d|={err}"

    # sigmoid_output branch.
    mlp_s = MLP(input_dim, hidden_dim, output_dim, num_layers,
                sigmoid_output=True, key=k_param2)
    out_s = jax.block_until_ready(mlp_s(x))
    ref_s = mlp_s.reference(x)
    assert out_s.shape == (batch, output_dim)
    assert jnp.allclose(out_s, ref_s, atol=3e-2, rtol=3e-2), "sigmoid mismatch"

    # Exercise the weight-streaming fallback path (forced) for coverage.
    out_f = jax.block_until_ready(mlp(x, force_streaming=True))
    errf = float(jnp.max(jnp.abs(out_f - ref)))
    assert jnp.allclose(out_f, ref, atol=3e-2, rtol=3e-2), \
        f"streaming mismatch max|d|={errf}"

    # Leading-batch-dims + ragged row-count path.
    x3 = jax.random.normal(k_x, (2, 5, input_dim), jnp.float32)
    out3 = jax.block_until_ready(mlp(x3))
    ref3 = mlp.reference(x3)
    assert out3.shape == (2, 5, output_dim)
    assert jnp.allclose(out3, ref3, atol=3e-2, rtol=3e-2), "3-D mismatch"

    print("KERNEL_OK")
</pallas_src>

<mosaic_0001>
module attributes {stable_mosaic.version = 11 : i64} {
  func.func @_mlp_fused_kernel(%arg0: i32, %arg1: memref<8x32xf32, #tpu.memory_space<vmem>>, %arg2: memref<32x128xbf16, #tpu.memory_space<vmem>>, %arg3: memref<128x128xbf16, #tpu.memory_space<vmem>>, %arg4: memref<128x128xbf16, #tpu.memory_space<vmem>>, %arg5: memref<1x128xf32, #tpu.memory_space<vmem>>, %arg6: memref<1x128xf32, #tpu.memory_space<vmem>>, %arg7: memref<1x128xf32, #tpu.memory_space<vmem>>, %arg8: memref<8x128xf32, #tpu.memory_space<vmem>>) attributes {dimension_semantics = [#tpu.dimension_semantics<parallel>], iteration_bounds = array<i64: 1>, scalar_prefetch = 0 : i64, scratch_operands = 0 : i64, tpu.core_type = #tpu.core_type<tc>, window_params = [{transform_indices = @transform_0, window_bounds = array<i64: 8, 32>}, {pipeline_mode = #tpu.pipeline_mode<synchronous>, transform_indices = @transform_1, window_bounds = array<i64: 32, 128>}, {pipeline_mode = #tpu.pipeline_mode<synchronous>, transform_indices = @transform_2, window_bounds = array<i64: 128, 128>}, {pipeline_mode = #tpu.pipeline_mode<synchronous>, transform_indices = @transform_3, window_bounds = array<i64: 128, 128>}, {pipeline_mode = #tpu.pipeline_mode<synchronous>, transform_indices = @transform_4, window_bounds = array<i64: 1, 128>}, {pipeline_mode = #tpu.pipeline_mode<synchronous>, transform_indices = @transform_5, window_bounds = array<i64: 1, 128>}, {pipeline_mode = #tpu.pipeline_mode<synchronous>, transform_indices = @transform_6, window_bounds = array<i64: 1, 128>}, {transform_indices = @transform_7, window_bounds = array<i64: 8, 128>}]} {
    %c0 = arith.constant 0 : index
    %c0_0 = arith.constant 0 : index
    %0 = vector.load %arg1[%c0, %c0_0] : memref<8x32xf32, #tpu.memory_space<vmem>>, vector<8x32xf32>
    %1 = arith.truncf %0 : vector<8x32xf32> to vector<8x32xbf16>
    %c0_1 = arith.constant 0 : index
    %c0_2 = arith.constant 0 : index
    %2 = vector.load %arg2[%c0_1, %c0_2] : memref<32x128xbf16, #tpu.memory_space<vmem>>, vector<32x128xbf16>
    %cst = arith.constant dense<0.000000e+00> : vector<8x128xf32>
    %3 = tpu.matmul %1, %2, %cst {dimension_numbers = #tpu.dot_dimension_numbers<[1], [0], [0], [1], [0, 0, 1, 1], [], []>} : vector<8x32xbf16>, vector<32x128xbf16>, vector<8x128xf32> -> vector<8x128xf32>
    %c0_3 = arith.constant 0 : index
    %c0_4 = arith.constant 0 : index
    %4 = vector.load %arg5[%c0_3, %c0_4] : memref<1x128xf32, #tpu.memory_space<vmem>>, vector<1x128xf32>
    %5 = vector.broadcast %4 : vector<1x128xf32> to vector<8x128xf32>
    %6 = arith.addf %3, %5 : vector<8x128xf32>
    %7 = arith.truncf %6 : vector<8x128xf32> to vector<8x128xbf16>
    %cst_5 = arith.constant 0.000000e+00 : bf16
    %8 = vector.broadcast %cst_5 : bf16 to vector<8x128xbf16>
    %9 = arith.maximumf %7, %8 : vector<8x128xbf16>
    %c0_6 = arith.constant 0 : index
    %c0_7 = arith.constant 0 : index
    %10 = vector.load %arg3[%c0_6, %c0_7] : memref<128x128xbf16, #tpu.memory_space<vmem>>, vector<128x128xbf16>
    %cst_8 = arith.constant dense<0.000000e+00> : vector<8x128xf32>
    %11 = tpu.matmul %9, %10, %cst_8 {dimension_numbers = #tpu.dot_dimension_numbers<[1], [0], [0], [1], [0, 0, 1, 1], [], []>} : vector<8x128xbf16>, vector<128x128xbf16>, vector<8x128xf32> -> vector<8x128xf32>
    %c0_9 = arith.constant 0 : index
    %c0_10 = arith.constant 0 : index
    %12 = vector.load %arg6[%c0_9, %c0_10] : memref<1x128xf32, #tpu.memory_space<vmem>>, vector<1x128xf32>
    %13 = vector.broadcast %12 : vector<1x128xf32> to vector<8x128xf32>
    %14 = arith.addf %11, %13 : vector<8x128xf32>
    %15 = arith.truncf %14 : vector<8x128xf32> to vector<8x128xbf16>
    %cst_11 = arith.constant 0.000000e+00 : bf16
    %16 = vector.broadcast %cst_11 : bf16 to vector<8x128xbf16>
    %17 = arith.maximumf %15, %16 : vector<8x128xbf16>
    %c0_12 = arith.constant 0 : index
    %c0_13 = arith.constant 0 : index
    %18 = vector.load %arg4[%c0_12, %c0_13] : memref<128x128xbf16, #tpu.memory_space<vmem>>, vector<128x128xbf16>
    %cst_14 = arith.constant dense<0.000000e+00> : vector<8x128xf32>
    %19 = tpu.matmul %17, %18, %cst_14 {dimension_numbers = #tpu.dot_dimension_numbers<[1], [0], [0], [1], [0, 0, 1, 1], [], []>} : vector<8x128xbf16>, vector<128x128xbf16>, vector<8x128xf32> -> vector<8x128xf32>
    %c0_15 = arith.constant 0 : index
    %c0_16 = arith.constant 0 : index
    %20 = vector.load %arg7[%c0_15, %c0_16] : memref<1x128xf32, #tpu.memory_space<vmem>>, vector<1x128xf32>
    %21 = vector.broadcast %20 : vector<1x128xf32> to vector<8x128xf32>
    %22 = arith.addf %19, %21 : vector<8x128xf32>
    %c0_17 = arith.constant 0 : index
    %c0_18 = arith.constant 0 : index
    %23 = vector.load %arg8[%c0_17, %c0_18] : memref<8x128xf32, #tpu.memory_space<vmem>>, vector<8x128xf32>
    tpu.vector_store %arg8[%c0_17, %c0_18], %22 {strides = array<i32>} : memref<8x128xf32, #tpu.memory_space<vmem>>, vector<8x128xf32>,
    return
  }
  func.func @transform_0(%arg0: i32) -> (i32, i32) {
    %c0_i32 = arith.constant 0 : i32
    %c0_i32_0 = arith.constant 0 : i32
    return %arg0, %c0_i32 : i32, i32
  }
  func.func @transform_1(%arg0: i32) -> (i32, i32) {
    %c0_i32 = arith.constant 0 : i32
    %c0_i32_0 = arith.constant 0 : i32
    %c0_i32_1 = arith.constant 0 : i32
    return %c0_i32, %c0_i32_0 : i32, i32
  }
  func.func @transform_2(%arg0: i32) -> (i32, i32) {
    %c0_i32 = arith.constant 0 : i32
    %c0_i32_0 = arith.constant 0 : i32
    %c0_i32_1 = arith.constant 0 : i32
    return %c0_i32, %c0_i32_0 : i32, i32
  }
  func.func @transform_3(%arg0: i32) -> (i32, i32) {
    %c0_i32 = arith.constant 0 : i32
    %c0_i32_0 = arith.constant 0 : i32
    %c0_i32_1 = arith.constant 0 : i32
    return %c0_i32, %c0_i32_0 : i32, i32
  }
  func.func @transform_4(%arg0: i32) -> (i32, i32) {
    %c0_i32 = arith.constant 0 : i32
    %c0_i32_0 = arith.constant 0 : i32
    %c0_i32_1 = arith.constant 0 : i32
    return %c0_i32, %c0_i32_0 : i32, i32
  }
  func.func @transform_5(%arg0: i32) -> (i32, i32) {
    %c0_i32 = arith.constant 0 : i32
    %c0_i32_0 = arith.constant 0 : i32
    %c0_i32_1 = arith.constant 0 : i32
    return %c0_i32, %c0_i32_0 : i32, i32
  }
  func.func @transform_6(%arg0: i32) -> (i32, i32) {
    %c0_i32 = arith.constant 0 : i32
    %c0_i32_0 = arith.constant 0 : i32
    %c0_i32_1 = arith.constant 0 : i32
    return %c0_i32, %c0_i32_0 : i32, i32
  }
  func.func @transform_7(%arg0: i32) -> (i32, i32) {
    %c0_i32 = arith.constant 0 : i32
    %c0_i32_0 = arith.constant 0 : i32
    return %arg0, %c0_i32 : i32, i32
  }
}

module attributes {stable_mosaic.version = 11 : i64} {
  func.func @_mlp_fused_kernel(%arg0: i32, %arg1: memref<8x32xf32, #tpu.memory_space<vmem>>, %arg2: memref<32x128xbf16, #tpu.memory_space<vmem>>, %arg3: memref<128x128xbf16, #tpu.memory_space<vmem>>, %arg4: memref<128x128xbf16, #tpu.memory_space<vmem>>, %arg5: memref<1x128xf32, #tpu.memory_space<vmem>>, %arg6: memref<1x128xf32, #tpu.memory_space<vmem>>, %arg7: memref<1x128xf32, #tpu.memory_space<vmem>>, %arg8: memref<8x128xf32, #tpu.memory_space<vmem>>) attributes {dimension_semantics = [#tpu.dimension_semantics<parallel>], iteration_bounds = array<i64: 1>, scalar_prefetch = 0 : i64, scratch_operands = 0 : i64, tpu.core_type = #tpu.core_type<tc>, window_params = [{transform_indices = @transform_0, window_bounds = array<i64: 8, 32>}, {pipeline_mode = #tpu.pipeline_mode<synchronous>, transform_indices = @transform_1, window_bounds = array<i64: 32, 128>}, {pipeline_mode = #tpu.pipeline_mode<synchronous>, transform_indices = @transform_2, window_bounds = array<i64: 128, 128>}, {pipeline_mode = #tpu.pipeline_mode<synchronous>, transform_indices = @transform_3, window_bounds = array<i64: 128, 128>}, {pipeline_mode = #tpu.pipeline_mode<synchronous>, transform_indices = @transform_4, window_bounds = array<i64: 1, 128>}, {pipeline_mode = #tpu.pipeline_mode<synchronous>, transform_indices = @transform_5, window_bounds = array<i64: 1, 128>}, {pipeline_mode = #tpu.pipeline_mode<synchronous>, transform_indices = @transform_6, window_bounds = array<i64: 1, 128>}, {transform_indices = @transform_7, window_bounds = array<i64: 8, 128>}]} {
    %c0 = arith.constant 0 : index
    %c0_0 = arith.constant 0 : index
    %0 = vector.load %arg1[%c0, %c0_0] : memref<8x32xf32, #tpu.memory_space<vmem>>, vector<8x32xf32>
    %1 = arith.truncf %0 : vector<8x32xf32> to vector<8x32xbf16>
    %c0_1 = arith.constant 0 : index
    %c0_2 = arith.constant 0 : index
    %2 = vector.load %arg2[%c0_1, %c0_2] : memref<32x128xbf16, #tpu.memory_space<vmem>>, vector<32x128xbf16>
    %cst = arith.constant dense<0.000000e+00> : vector<8x128xf32>
    %3 = tpu.matmul %1, %2, %cst {dimension_numbers = #tpu.dot_dimension_numbers<[1], [0], [0], [1], [0, 0, 1, 1], [], []>} : vector<8x32xbf16>, vector<32x128xbf16>, vector<8x128xf32> -> vector<8x128xf32>
    %c0_3 = arith.constant 0 : index
    %c0_4 = arith.constant 0 : index
    %4 = vector.load %arg5[%c0_3, %c0_4] : memref<1x128xf32, #tpu.memory_space<vmem>>, vector<1x128xf32>
    %5 = vector.broadcast %4 : vector<1x128xf32> to vector<8x128xf32>
    %6 = arith.addf %3, %5 : vector<8x128xf32>
    %7 = arith.truncf %6 : vector<8x128xf32> to vector<8x128xbf16>
    %cst_5 = arith.constant 0.000000e+00 : bf16
    %8 = vector.broadcast %cst_5 : bf16 to vector<8x128xbf16>
    %9 = arith.maximumf %7, %8 : vector<8x128xbf16>
    %c0_6 = arith.constant 0 : index
    %c0_7 = arith.constant 0 : index
    %10 = vector.load %arg3[%c0_6, %c0_7] : memref<128x128xbf16, #tpu.memory_space<vmem>>, vector<128x128xbf16>
    %cst_8 = arith.constant dense<0.000000e+00> : vector<8x128xf32>
    %11 = tpu.matmul %9, %10, %cst_8 {dimension_numbers = #tpu.dot_dimension_numbers<[1], [0], [0], [1], [0, 0, 1, 1], [], []>} : vector<8x128xbf16>, vector<128x128xbf16>, vector<8x128xf32> -> vector<8x128xf32>
    %c0_9 = arith.constant 0 : index
    %c0_10 = arith.constant 0 : index
    %12 = vector.load %arg6[%c0_9, %c0_10] : memref<1x128xf32, #tpu.memory_space<vmem>>, vector<1x128xf32>
    %13 = vector.broadcast %12 : vector<1x128xf32> to vector<8x128xf32>
    %14 = arith.addf %11, %13 : vector<8x128xf32>
    %15 = arith.truncf %14 : vector<8x128xf32> to vector<8x128xbf16>
    %cst_11 = arith.constant 0.000000e+00 : bf16
    %16 = vector.broadcast %cst_11 : bf16 to vector<8x128xbf16>
    %17 = arith.maximumf %15, %16 : vector<8x128xbf16>
    %c0_12 = arith.constant 0 : index
    %c0_13 = arith.constant 0 : index
    %18 = vector.load %arg4[%c0_12, %c0_13] : memref<128x128xbf16, #tpu.memory_space<vmem>>, vector<128x128xbf16>
    %cst_14 = arith.constant dense<0.000000e+00> : vector<8x128xf32>
    %19 = tpu.matmul %17, %18, %cst_14 {dimension_numbers = #tpu.dot_dimension_numbers<[1], [0], [0], [1], [0, 0, 1, 1], [], []>} : vector<8x128xbf16>, vector<128x128xbf16>, vector<8x128xf32> -> vector<8x128xf32>
    %c0_15 = arith.constant 0 : index
    %c0_16 = arith.constant 0 : index
    %20 = vector.load %arg7[%c0_15, %c0_16] : memref<1x128xf32, #tpu.memory_space<vmem>>, vector<1x128xf32>
    %21 = vector.broadcast %20 : vector<1x128xf32> to vector<8x128xf32>
    %22 = arith.addf %19, %21 : vector<8x128xf32>
    %c0_17 = arith.constant 0 : index
    %c0_18 = arith.constant 0 : index
    %23 = vector.load %arg8[%c0_17, %c0_18] : memref<8x128xf32, #tpu.memory_space<vmem>>, vector<8x128xf32>
    tpu.vector_store %arg8[%c0_17, %c0_18], %22 {strides = array<i32>} : memref<8x128xf32, #tpu.memory_space<vmem>>, vector<8x128xf32>,
    return
  }
  func.func @transform_0(%arg0: i32) -> (i32, i32) {
    %c0_i32 = arith.constant 0 : i32
    %c0_i32_0 = arith.constant 0 : i32
    return %arg0, %c0_i32 : i32, i32
  }
  func.func @transform_1(%arg0: i32) -> (i32, i32) {
    %c0_i32 = arith.constant 0 : i32
    %c0_i32_0 = arith.constant 0 : i32
    %c0_i32_1 = arith.constant 0 : i32
    return %c0_i32, %c0_i32_0 : i32, i32
  }
  func.func @transform_2(%arg0: i32) -> (i32, i32) {
    %c0_i32 = arith.constant 0 : i32
    %c0_i32_0 = arith.constant 0 : i32
    %c0_i32_1 = arith.constant 0 : i32
    return %c0_i32, %c0_i32_0 : i32, i32
  }
  func.func @transform_3(%arg0: i32) -> (i32, i32) {
    %c0_i32 = arith.constant 0 : i32
    %c0_i32_0 = arith.constant 0 : i32
    %c0_i32_1 = arith.constant 0 : i32
    return %c0_i32, %c0_i32_0 : i32, i32
  }
  func.func @transform_4(%arg0: i32) -> (i32, i32) {
    %c0_i32 = arith.constant 0 : i32
    %c0_i32_0 = arith.constant 0 : i32
    %c0_i32_1 = arith.constant 0 : i32
    return %c0_i32, %c0_i32_0 : i32, i32
  }
  func.func @transform_5(%arg0: i32) -> (i32, i32) {
    %c0_i32 = arith.constant 0 : i32
    %c0_i32_0 = arith.constant 0 : i32
    %c0_i32_1 = arith.constant 0 : i32
    return %c0_i32, %c0_i32_0 : i32, i32
  }
  func.func @transform_6(%arg0: i32) -> (i32, i32) {
    %c0_i32 = arith.constant 0 : i32
    %c0_i32_0 = arith.constant 0 : i32
    %c0_i32_1 = arith.constant 0 : i32
    return %c0_i32, %c0_i32_0 : i32, i32
  }
  func.func @transform_7(%arg0: i32) -> (i32, i32) {
    %c0_i32 = arith.constant 0 : i32
    %c0_i32_0 = arith.constant 0 : i32
    return %arg0, %c0_i32 : i32, i32
  }
}

</mosaic_0001>

<bundles_post_ra>
// kernel: tpu_custom_call.1
= control target key start
LH: loop header
LB: loop body
LE: loop exit
PB: predicated region body
PF: predicated region fallthrough
CT: control target
= control target key end

     0   :  { %12 = vsyncpa [#allocation3], 0  ;;  %s783_s0 = inlined_call_operand.hbm [shape: f32[8,32], index: 0, kind: input, shape index: {}]   ;;  %s784_s1 = inlined_call_operand.hbm [shape: bf16[32,128], index: 1, kind: input, shape index: {}]   ;;  %s785_s2 = inlined_call_operand.hbm [shape: bf16[128,128], index: 2, kind: input, shape index: {}]   ;;  %s786_s3 = inlined_call_operand.hbm [shape: bf16[128,128], index: 3, kind: input, shape index: {}]   ;;  %s787_s4 = inlined_call_operand.vmem [shape: f32[1,128], index: 4, kind: input, shape index: {}]   ;;  %s788_s5 = inlined_call_operand.vmem [shape: f32[1,128], index: 5, kind: input, shape index: {}]   ;;  %s789_s6 = inlined_call_operand.vmem [shape: f32[1,128], index: 6, kind: input, shape index: {}]   ;;  %s790_s7 = inlined_call_operand.hbm [shape: f32[8,128], index: 7, kind: output, shape index: {}]  }
   0x1   :  { %13 = vsyncpa [#allocation6], 0 }
   0x2   :  { %14 = vsyncpa [#allocation9], 0 }
   0x3   :  { %15 = vsyncpa [#allocation4], 0  ;;  %s631_s24 = smov [#allocation5]   ;;  %s513_s28 = scalar_lea.hbm %s784_s1, 256 }
   0x4   :  { %s31_s25 = sshll.u32 %s631_s24, 4  ;;  %p514_p0 = scmp.ne.s32.totalorder %s784_s1, %s513_s28  ;;  %s32_s25 = int_to_ptr.vmem [resolvable:$true] %s31_s25 }
   0x5   :  { %p517_p1 = scmp.lt.u32.totalorder %s513_s28, %s784_s1 }
   0x7   :  { %p519_p2 = pnand %p517_p1, %p514_p0 }
   0x9   :  { %522 = shalt.err (!%p519_p2)
}
   0xa   :  { %s523_s10 = scalar_lea.vmem %s32_s25, 256  ;;  %p528_p4 = scmp.lt.s32.totalorder %s32_s25, %s32_s25 }
   0xb   :  { %p524_p3 = scmp.ne.s32.totalorder %s32_s25, %s523_s10  ;;  %p529_p5 = scmp.lt.s32.totalorder %s523_s10, %s523_s10 }
   0xd   :  { %p530_p6 = por %p529_p5, %p528_p4 }
   0xf   :  { %p531_p7 = pnand %p530_p6, %p524_p3 }
  0x11   :  { %534 = shalt.err (!%p531_p7)
}
  0x12   :  { %s632_s11 = smov 64   ;;  %s633_s12 = smov 4  }
  0x13   :  { %37 = dma.hbm_to_vmem [thread:$0]  %s784_s1, 256, %s32_s25, [#allocation6], %s632_s11, %s632_s11, %s633_s12  }
  0x14   :  { %s634_s15 = smov [#allocation2]   ;;  %s635_s17 = smov [#allocation7]  }
  0x15   :  { %s22_s16 = sshll.u32 %s634_s15, 4  ;;  %s43_s18 = sshll.u32 %s635_s17, 4  ;;  %s23_s16 = int_to_ptr.vmem [resolvable:$true] %s22_s16  ;;  %s44_s18 = int_to_ptr.vmem [resolvable:$true] %s43_s18 }
  0x16   :  { %s535_s21 = scalar_lea.hbm %s783_s0, 128 }
  0x17   :  { %p536_p8 = scmp.ne.s32.totalorder %s783_s0, %s535_s21  ;;  %p539_p9 = scmp.lt.u32.totalorder %s535_s21, %s783_s0 }
  0x19   :  { %p541_p10 = pnand %p539_p9, %p536_p8 }
  0x1b   :  { %544 = shalt.err (!%p541_p10)
}
  0x1c   :  { %s545_s1 = scalar_lea.vmem %s23_s16, 128  ;;  %p550_p12 = scmp.lt.s32.totalorder %s23_s16, %s23_s16 }
  0x1d   :  { %p546_p11 = scmp.ne.s32.totalorder %s23_s16, %s545_s1  ;;  %p551_p13 = scmp.lt.s32.totalorder %s545_s1, %s545_s1 }
  0x1f   :  { %p552_p0 = por %p551_p13, %p550_p12 }
  0x21   :  { %p553_p1 = pnand %p552_p0, %p546_p11 }
  0x23   :  { %556 = shalt.err (!%p553_p1)
}
  0x24   :  { %25 = dma.hbm_to_vmem [thread:$0]  %s783_s0, 128, %s23_s16, [#allocation3]  }
  0x25   :  { %s557_s30 = scalar_lea.hbm %s785_s2, 1024 }
  0x26   :  { %p558_p2 = scmp.ne.s32.totalorder %s785_s2, %s557_s30  ;;  %p561_p3 = scmp.lt.u32.totalorder %s557_s30, %s785_s2 }
  0x28   :  { %p563_p4 = pnand %p561_p3, %p558_p2 }
  0x2a   :  { %566 = shalt.err (!%p563_p4)
}
  0x2b   :  { %s567_s14 = scalar_lea.vmem %s44_s18, 1024  ;;  %p572_p6 = scmp.lt.s32.totalorder %s44_s18, %s44_s18 }
  0x2c   :  { %p568_p5 = scmp.ne.s32.totalorder %s44_s18, %s567_s14  ;;  %p573_p7 = scmp.lt.s32.totalorder %s567_s14, %s567_s14 }
  0x2e   :  { %p574_p8 = por %p573_p7, %p572_p6 }
  0x30   :  { %p575_p9 = pnand %p574_p8, %p568_p5 }
  0x32   :  { %578 = shalt.err (!%p575_p9)
}
  0x33   :  { %49 = dma.hbm_to_vmem [thread:$0]  %s785_s2, 1024, %s44_s18, [#allocation6], %s632_s11, %s632_s11, %s633_s12  }
  0x34   :  { %s636_s16 = smov [#allocation8]   ;;  %s579_s21 = scalar_lea.hbm %s786_s3, 1024 }
  0x35   :  { %s55_s17 = sshll.u32 %s636_s16, 4  ;;  %p580_p10 = scmp.ne.s32.totalorder %s786_s3, %s579_s21  ;;  %s56_s17 = int_to_ptr.vmem [resolvable:$true] %s55_s17 }
  0x36   :  { %p583_p11 = scmp.lt.u32.totalorder %s579_s21, %s786_s3 }
  0x38   :  { %p585_p12 = pnand %p583_p11, %p580_p10 }
  0x3a   :  { %588 = shalt.err (!%p585_p12)
}
  0x3b   :  { %s589_s1 = scalar_lea.vmem %s56_s17, 1024  ;;  %p594_p0 = scmp.lt.s32.totalorder %s56_s17, %s56_s17 }
  0x3c   :  { %p590_p13 = scmp.ne.s32.totalorder %s56_s17, %s589_s1  ;;  %p595_p1 = scmp.lt.s32.totalorder %s589_s1, %s589_s1 }
  0x3e   :  { %p596_p2 = por %p595_p1, %p594_p0 }
  0x40   :  { %p597_p3 = pnand %p596_p2, %p590_p13 }
  0x42   :  { %600 = shalt.err (!%p597_p3)
}
  0x43   :  { %61 = dma.hbm_to_vmem [thread:$0]  %s786_s3, 1024, %s56_s17, [#allocation9], %s632_s11, %s632_s11, %s633_s12  }
  0x44   :  { %623 = dma.done.wait [#allocation3], 128  }
  0x45   :  { %624 = vsyncadd [#allocation3], 4294967168 }
  0x46   :  { %625 = dma.done.wait [#allocation6], 1280  }
  0x47   :  { %626 = vsyncadd [#allocation6], 4294966016 }
  0x48   :  { %627 = dma.done.wait [#allocation9], 1024  }
  0x49   :  { %628 = vsyncadd [#allocation9], 4294966272  ;;  %v637_v0 = vmov 0.0   ;;  %vm638_vm0 = vmmov 0   ;;  %v495_v1 = vld [vmem:[#allocation5] sm:$0xff]   ;;  %v496_v2 = vld [vmem:[#allocation5 + $0x8] sm:$0xff]  }
  0x4a   :  { %437 = vmatprep.subr.bf16.mxu0 %v637_v0  ;;  %441 = vmatprep.mubr.msk.bf16.mxu0 %vm638_vm0, %v637_v0  ;;  %v81_v3 = vld [vmem:[#allocation2] sm:$0xff]  ;;  %v497_v4 = vld [vmem:[#allocation7] sm:$0xff]   ;;  %vm106_vm1 = vcmask 261120   ;;  %v499_v7 = vld [vmem:[#allocation7 + $0x10] sm:$0xff]   ;;  %v639_v26 = vmov 0   ;;  %s640_s28 = smov [#allocation10]  }
  0x4b   :  { %445 = vmatprep.subr.bf16.mxu1 %v637_v0  ;;  %461 = vmatprep.mubr.msk.bf16.mxu1 %vm638_vm0, %v637_v0  ;;  %v82_v5 = vpack.c.bf16 %v81_v3, %v81_v3  ;;  %v498_v6 = vld [vmem:[#allocation7 + $0x8] sm:$0xff]   ;;  %v500_v8 = vld [vmem:[#allocation7 + $0x18] sm:$0xff]   ;;  %v501_v9 = vld [vmem:[#allocation7 + $0x20] sm:$0xff]   ;;  %s383_s29 = sshll.u32 %s640_s28, 4  ;;  %s384_s29 = int_to_ptr.vmem [resolvable:$true] %s383_s29 }
  0x4c   :  { %438 = vmatpush3.bf16.msra.mxu0 %v495_v1  ;;  %446 = vmatpush3.bf16.msra.mxu1 %v497_v4  ;;  %v502_v10 = vld [vmem:[#allocation7 + $0x28] sm:$0xff]   ;;  %v503_v11 = vld [vmem:[#allocation7 + $0x30] sm:$0xff]   ;;  %v504_v12 = vld [vmem:[#allocation7 + $0x38] sm:$0xff]   ;;  %p606_p5 = scmp.lt.s32.totalorder %s384_s29, %s384_s29 }
  0x4d   :  { %439 = vmatprep.subr.bf16.mxu0 %v637_v0  ;;  %447 = vmatprep.subr.bf16.mxu1 %v637_v0  ;;  %v505_v13 = vld [vmem:[#allocation8] sm:$0xff]   ;;  %v506_v14 = vld [vmem:[#allocation8 + $0x8] sm:$0xff]   ;;  %v507_v15 = vld [vmem:[#allocation8 + $0x10] sm:$0xff]  }
  0x4e   :  { %v508_v16 = vld [vmem:[#allocation8 + $0x18] sm:$0xff]   ;;  %v509_v17 = vld [vmem:[#allocation8 + $0x20] sm:$0xff]   ;;  %v510_v18 = vld [vmem:[#allocation8 + $0x28] sm:$0xff]  }
  0x4f   :  { %v394_v19 = vld [vmem:[%s787_s4] ss:$0 sm:$0xff]  ;;  %v511_v28 = vld [vmem:[#allocation8 + $0x30] sm:$0xff]   ;;  %v512_v29 = vld [vmem:[#allocation8 + $0x38] sm:$0xff]  }
  0x50   :  { %440 = vmatpush3.bf16.msra.mxu0 %v496_v2  ;;  %448 = vmatpush3.bf16.msra.mxu1 %v498_v6  ;;  %v398_v30 = vld [vmem:[%s788_s5] ss:$0 sm:$0xff]  ;;  %s601_s5 = scalar_lea.vmem %s384_s29, 128 }
  0x51   :  { %465 = vmatprep.subr.bf16.mxu0 %v637_v0  ;;  %449 = vmatprep.subr.bf16.mxu1 %v637_v0  ;;  %v407_v38 = vld [vmem:[%s789_s6] ss:$0 sm:$0xff]  ;;  %p602_p4 = scmp.ne.s32.totalorder %s384_s29, %s601_s5  ;;  %p607_p6 = scmp.lt.s32.totalorder %s601_s5, %s601_s5 }
  0x53   :  { %442 = vmatmul.mubr.msk.bf16.vlgmr.msra.gmra.mrb[0].mxu0 %vm106_vm1, %v82_v5  ;;  %p608_p7 = por %p607_p6, %p606_p5 }
  0x54   :  { %481 = vmatprep.mubr.msk.bf16.mxu0 %vm638_vm0, %v637_v0  ;;  %450 = vmatpush3.bf16.msra.mxu1 %v499_v7 }
  0x55   :  { %451 = vmatprep.subr.bf16.mxu1 %v637_v0  ;;  %466 = vmatpush3.bf16.msra.mxu0 %v505_v13  ;;  %p609_p8 = pnand %p608_p7, %p602_p4 }
  0x56   :  { %467 = vmatprep.subr.bf16.mxu0 %v637_v0 }
  0x58   :  { %452 = vmatpush3.bf16.msra.mxu1 %v500_v8 }
  0x59   :  { %453 = vmatprep.subr.bf16.mxu1 %v637_v0  ;;  %468 = vmatpush3.bf16.msra.mxu0 %v506_v14 }
  0x5a   :  { %469 = vmatprep.subr.bf16.mxu0 %v637_v0 }
  0x5c   :  { %454 = vmatpush3.bf16.msra.mxu1 %v501_v9 }
  0x5d   :  { %455 = vmatprep.subr.bf16.mxu1 %v637_v0  ;;  %470 = vmatpush3.bf16.msra.mxu0 %v507_v15 }
  0x5e   :  { %471 = vmatprep.subr.bf16.mxu0 %v637_v0 }
  0x60   :  { %456 = vmatpush3.bf16.msra.mxu1 %v502_v10 }
  0x61   :  { %457 = vmatprep.subr.bf16.mxu1 %v637_v0  ;;  %472 = vmatpush3.bf16.msra.mxu0 %v508_v16 }
  0x62   :  { %473 = vmatprep.subr.bf16.mxu0 %v637_v0 }
  0x64   :  { %458 = vmatpush3.bf16.msra.mxu1 %v503_v11 }
  0x65   :  { %459 = vmatprep.subr.bf16.mxu1 %v637_v0  ;;  %474 = vmatpush3.bf16.msra.mxu0 %v509_v17 }
  0x66   :  { %475 = vmatprep.subr.bf16.mxu0 %v637_v0 }
  0x68   :  { %460 = vmatpush3.bf16.msra.mxu1 %v504_v12 }
  0x69   :  { %476 = vmatpush3.bf16.msra.mxu0 %v510_v18 }
  0x6a   :  { %477 = vmatprep.subr.bf16.mxu0 %v637_v0 }
  0x6d   :  { %478 = vmatpush3.bf16.msra.mxu0 %v511_v28 }
  0x6e   :  { %479 = vmatprep.subr.bf16.mxu0 %v637_v0 }
  0x71   :  { %480 = vmatpush3.bf16.msra.mxu0 %v512_v29 }
 0x126   :  { %v144_v20 = vpop.f32.mrb[0].mxu0 }
 0x127   :  { %v145_v21 = vadd.f32 %v394_v19, %v144_v20  ;;  %v443_v22 = vpop.f32.mrb[1].mxu0 }
 0x128   :  { %v147_v23 = vpop.f32.mrb[2].mxu0 }
 0x129   :  { %v150_v24 = vpack.c.bf16 %v145_v21, %v145_v21  ;;  %v444_v25 = vpop.f32.mrb[3].mxu0 }
 0x12b   :  { %v151_v27 = vmax.bf16 %v639_v26, %v150_v24 }
 0x12d   :  { %462 = vmatmul.mubr.bf16.vlgmr.msra.gmra.mrb[0].mxu1 %v151_v27 }
 0x200   :  { %v257_v31 = vpop.f32.mrb[0].mxu1 }
 0x201   :  { %v258_v32 = vadd.f32 %v398_v30, %v257_v31  ;;  %v463_v33 = vpop.f32.mrb[1].mxu1 }
 0x202   :  { %v260_v34 = vpop.f32.mrb[2].mxu1 }
 0x203   :  { %v263_v35 = vpack.c.bf16 %v258_v32, %v258_v32  ;;  %v464_v36 = vpop.f32.mrb[3].mxu1 }
 0x205   :  { %v264_v37 = vmax.bf16 %v639_v26, %v263_v35 }
 0x207   :  { %482 = vmatmul.mubr.bf16.vlgmr.msra.gmra.mrb[4].mxu0 %v264_v37 }
 0x2da   :  { %v370_v39 = vpop.f32.mrb[4].mxu0 }
 0x2db   :  { %v371_v40 = vadd.f32 %v407_v38, %v370_v39  ;;  %v483_v41 = vpop.f32.mrb[5].mxu0 }
 0x2dc   :  { %v373_v42 = vpop.f32.mrb[6].mxu0 }
 0x2dd   :  { %376 = vst [vmem:[#allocation10] sm:$0xff] %v371_v40  ;;  %v484_v43 = vpop.f32.mrb[7].mxu0 }
 0x2de   :  { %612 = shalt.err (!%p609_p8)
}
 0x2df   :  { %s613_s6 = scalar_lea.hbm %s790_s7, 128 }
 0x2e0   :  { %p614_p9 = scmp.ne.s32.totalorder %s790_s7, %s613_s6  ;;  %p617_p10 = scmp.lt.u32.totalorder %s613_s6, %s790_s7 }
 0x2e2   :  { %p619_p11 = pnand %p617_p10, %p614_p9 }
 0x2e4   :  { %622 = shalt.err (!%p619_p11)
}
 0x2e5   :  { %386 = dma.vmem_to_hbm [thread:$0]  %s384_s29, 128, %s790_s7, [#allocation4]  }
 0x2e6   :  { %629 = dma.done.wait [#allocation4], 128  }
 0x2e7   :  { %630 = vsyncadd [#allocation4], 4294967168 }
 0x2e8   :  { %390 = vsyncpa [#allocation3], 1 }
 0x2e9   :  { %391 = vsyncpa [#allocation6], 1 }
 0x2ea   :  { %392 = vsyncpa [#allocation9], 1 }
 0x2eb   :  { %393 = vsyncpa [#allocation4], 1 }

// kernel: tpu_custom_call.1
= control target key start
LH: loop header
LB: loop body
LE: loop exit
PB: predicated region body
PF: predicated region fallthrough
CT: control target
= control target key end

     0   :  { %12 = vsyncpa [#allocation3], 0  ;;  %s783_s0 = inlined_call_operand.hbm [shape: f32[8,32], index: 0, kind: input, shape index: {}]   ;;  %s784_s1 = inlined_call_operand.hbm [shape: bf16[32,128], index: 1, kind: input, shape index: {}]   ;;  %s785_s2 = inlined_call_operand.hbm [shape: bf16[128,128], index: 2, kind: input, shape index: {}]   ;;  %s786_s3 = inlined_call_operand.hbm [shape: bf16[128,128], index: 3, kind: input, shape index: {}]   ;;  %s787_s4 = inlined_call_operand.vmem [shape: f32[1,128], index: 4, kind: input, shape index: {}]   ;;  %s788_s5 = inlined_call_operand.vmem [shape: f32[1,128], index: 5, kind: input, shape index: {}]   ;;  %s789_s6 = inlined_call_operand.vmem [shape: f32[1,128], index: 6, kind: input, shape index: {}]   ;;  %s790_s7 = inlined_call_operand.hbm [shape: f32[8,128], index: 7, kind: output, shape index: {}]  }
   0x1   :  { %13 = vsyncpa [#allocation6], 0 }
   0x2   :  { %14 = vsyncpa [#allocation9], 0 }
   0x3   :  { %15 = vsyncpa [#allocation4], 0  ;;  %s631_s24 = smov [#allocation5]   ;;  %s513_s28 = scalar_lea.hbm %s784_s1, 256 }
   0x4   :  { %s31_s25 = sshll.u32 %s631_s24, 4  ;;  %p514_p0 = scmp.ne.s32.totalorder %s784_s1, %s513_s28  ;;  %s32_s25 = int_to_ptr.vmem [resolvable:$true] %s31_s25 }
   0x5   :  { %p517_p1 = scmp.lt.u32.totalorder %s513_s28, %s784_s1 }
   0x7   :  { %p519_p2 = pnand %p517_p1, %p514_p0 }
   0x9   :  { %522 = shalt.err (!%p519_p2)
}
   0xa   :  { %s523_s10 = scalar_lea.vmem %s32_s25, 256  ;;  %p528_p4 = scmp.lt.s32.totalorder %s32_s25, %s32_s25 }
   0xb   :  { %p524_p3 = scmp.ne.s32.totalorder %s32_s25, %s523_s10  ;;  %p529_p5 = scmp.lt.s32.totalorder %s523_s10, %s523_s10 }
   0xd   :  { %p530_p6 = por %p529_p5, %p528_p4 }
   0xf   :  { %p531_p7 = pnand %p530_p6, %p524_p3 }
  0x11   :  { %534 = shalt.err (!%p531_p7)
}
  0x12   :  { %s632_s11 = smov 64   ;;  %s633_s12 = smov 4  }
  0x13   :  { %37 = dma.hbm_to_vmem [thread:$0]  %s784_s1, 256, %s32_s25, [#allocation6], %s632_s11, %s632_s11, %s633_s12  }
  0x14   :  { %s634_s15 = smov [#allocation2]   ;;  %s635_s17 = smov [#allocation7]  }
  0x15   :  { %s22_s16 = sshll.u32 %s634_s15, 4  ;;  %s43_s18 = sshll.u32 %s635_s17, 4  ;;  %s23_s16 = int_to_ptr.vmem [resolvable:$true] %s22_s16  ;;  %s44_s18 = int_to_ptr.vmem [resolvable:$true] %s43_s18 }
  0x16   :  { %s535_s21 = scalar_lea.hbm %s783_s0, 128 }
  0x17   :  { %p536_p8 = scmp.ne.s32.totalorder %s783_s0, %s535_s21  ;;  %p539_p9 = scmp.lt.u32.totalorder %s535_s21, %s783_s0 }
  0x19   :  { %p541_p10 = pnand %p539_p9, %p536_p8 }
  0x1b   :  { %544 = shalt.err (!%p541_p10)
}
  0x1c   :  { %s545_s1 = scalar_lea.vmem %s23_s16, 128  ;;  %p550_p12 = scmp.lt.s32.totalorder %s23_s16, %s23_s16 }
  0x1d   :  { %p546_p11 = scmp.ne.s32.totalorder %s23_s16, %s545_s1  ;;  %p551_p13 = scmp.lt.s32.totalorder %s545_s1, %s545_s1 }
  0x1f   :  { %p552_p0 = por %p551_p13, %p550_p12 }
  0x21   :  { %p553_p1 = pnand %p552_p0, %p546_p11 }
  0x23   :  { %556 = shalt.err (!%p553_p1)
}
  0x24   :  { %25 = dma.hbm_to_vmem [thread:$0]  %s783_s0, 128, %s23_s16, [#allocation3]  }
  0x25   :  { %s557_s30 = scalar_lea.hbm %s785_s2, 1024 }
  0x26   :  { %p558_p2 = scmp.ne.s32.totalorder %s785_s2, %s557_s30  ;;  %p561_p3 = scmp.lt.u32.totalorder %s557_s30, %s785_s2 }
  0x28   :  { %p563_p4 = pnand %p561_p3, %p558_p2 }
  0x2a   :  { %566 = shalt.err (!%p563_p4)
}
  0x2b   :  { %s567_s14 = scalar_lea.vmem %s44_s18, 1024  ;;  %p572_p6 = scmp.lt.s32.totalorder %s44_s18, %s44_s18 }
  0x2c   :  { %p568_p5 = scmp.ne.s32.totalorder %s44_s18, %s567_s14  ;;  %p573_p7 = scmp.lt.s32.totalorder %s567_s14, %s567_s14 }
  0x2e   :  { %p574_p8 = por %p573_p7, %p572_p6 }
  0x30   :  { %p575_p9 = pnand %p574_p8, %p568_p5 }
  0x32   :  { %578 = shalt.err (!%p575_p9)
}
  0x33   :  { %49 = dma.hbm_to_vmem [thread:$0]  %s785_s2, 1024, %s44_s18, [#allocation6], %s632_s11, %s632_s11, %s633_s12  }
  0x34   :  { %s636_s16 = smov [#allocation8]   ;;  %s579_s21 = scalar_lea.hbm %s786_s3, 1024 }
  0x35   :  { %s55_s17 = sshll.u32 %s636_s16, 4  ;;  %p580_p10 = scmp.ne.s32.totalorder %s786_s3, %s579_s21  ;;  %s56_s17 = int_to_ptr.vmem [resolvable:$true] %s55_s17 }
  0x36   :  { %p583_p11 = scmp.lt.u32.totalorder %s579_s21, %s786_s3 }
  0x38   :  { %p585_p12 = pnand %p583_p11, %p580_p10 }
  0x3a   :  { %588 = shalt.err (!%p585_p12)
}
  0x3b   :  { %s589_s1 = scalar_lea.vmem %s56_s17, 1024  ;;  %p594_p0 = scmp.lt.s32.totalorder %s56_s17, %s56_s17 }
  0x3c   :  { %p590_p13 = scmp.ne.s32.totalorder %s56_s17, %s589_s1  ;;  %p595_p1 = scmp.lt.s32.totalorder %s589_s1, %s589_s1 }
  0x3e   :  { %p596_p2 = por %p595_p1, %p594_p0 }
  0x40   :  { %p597_p3 = pnand %p596_p2, %p590_p13 }
  0x42   :  { %600 = shalt.err (!%p597_p3)
}
  0x43   :  { %61 = dma.hbm_to_vmem [thread:$0]  %s786_s3, 1024, %s56_s17, [#allocation9], %s632_s11, %s632_s11, %s633_s12  }
  0x44   :  { %623 = dma.done.wait [#allocation3], 128  }
  0x45   :  { %624 = vsyncadd [#allocation3], 4294967168 }
  0x46   :  { %625 = dma.done.wait [#allocation6], 1280  }
  0x47   :  { %626 = vsyncadd [#allocation6], 4294966016 }
  0x48   :  { %627 = dma.done.wait [#allocation9], 1024  }
  0x49   :  { %628 = vsyncadd [#allocation9], 4294966272  ;;  %v637_v0 = vmov 0.0   ;;  %vm638_vm0 = vmmov 0   ;;  %v495_v1 = vld [vmem:[#allocation5] sm:$0xff]   ;;  %v496_v2 = vld [vmem:[#allocation5 + $0x8] sm:$0xff]  }
  0x4a   :  { %437 = vmatprep.subr.bf16.mxu0 %v637_v0  ;;  %441 = vmatprep.mubr.msk.bf16.mxu0 %vm638_vm0, %v637_v0  ;;  %v81_v3 = vld [vmem:[#allocation2] sm:$0xff]  ;;  %v497_v4 = vld [vmem:[#allocation7] sm:$0xff]   ;;  %vm106_vm1 = vcmask 261120   ;;  %v499_v7 = vld [vmem:[#allocation7 + $0x10] sm:$0xff]   ;;  %v639_v26 = vmov 0   ;;  %s640_s28 = smov [#allocation10]  }
  0x4b   :  { %445 = vmatprep.subr.bf16.mxu1 %v637_v0  ;;  %461 = vmatprep.mubr.msk.bf16.mxu1 %vm638_vm0, %v637_v0  ;;  %v82_v5 = vpack.c.bf16 %v81_v3, %v81_v3  ;;  %v498_v6 = vld [vmem:[#allocation7 + $0x8] sm:$0xff]   ;;  %v500_v8 = vld [vmem:[#allocation7 + $0x18] sm:$0xff]   ;;  %v501_v9 = vld [vmem:[#allocation7 + $0x20] sm:$0xff]   ;;  %s383_s29 = sshll.u32 %s640_s28, 4  ;;  %s384_s29 = int_to_ptr.vmem [resolvable:$true] %s383_s29 }
  0x4c   :  { %438 = vmatpush3.bf16.msra.mxu0 %v495_v1  ;;  %446 = vmatpush3.bf16.msra.mxu1 %v497_v4  ;;  %v502_v10 = vld [vmem:[#allocation7 + $0x28] sm:$0xff]   ;;  %v503_v11 = vld [vmem:[#allocation7 + $0x30] sm:$0xff]   ;;  %v504_v12 = vld [vmem:[#allocation7 + $0x38] sm:$0xff]   ;;  %p606_p5 = scmp.lt.s32.totalorder %s384_s29, %s384_s29 }
  0x4d   :  { %439 = vmatprep.subr.bf16.mxu0 %v637_v0  ;;  %447 = vmatprep.subr.bf16.mxu1 %v637_v0  ;;  %v505_v13 = vld [vmem:[#allocation8] sm:$0xff]   ;;  %v506_v14 = vld [vmem:[#allocation8 + $0x8] sm:$0xff]   ;;  %v507_v15 = vld [vmem:[#allocation8 + $0x10] sm:$0xff]  }
  0x4e   :  { %v508_v16 = vld [vmem:[#allocation8 + $0x18] sm:$0xff]   ;;  %v509_v17 = vld [vmem:[#allocation8 + $0x20] sm:$0xff]   ;;  %v510_v18 = vld [vmem:[#allocation8 + $0x28] sm:$0xff]  }
  0x4f   :  { %v394_v19 = vld [vmem:[%s787_s4] ss:$0 sm:$0xff]  ;;  %v511_v28 = vld [vmem:[#allocation8 + $0x30] sm:$0xff]   ;;  %v512_v29 = vld [vmem:[#allocation8 + $0x38] sm:$0xff]  }
  0x50   :  { %440 = vmatpush3.bf16.msra.mxu0 %v496_v2  ;;  %448 = vmatpush3.bf16.msra.mxu1 %v498_v6  ;;  %v398_v30 = vld [vmem:[%s788_s5] ss:$0 sm:$0xff]  ;;  %s601_s5 = scalar_lea.vmem %s384_s29, 128 }
  0x51   :  { %465 = vmatprep.subr.bf16.mxu0 %v637_v0  ;;  %449 = vmatprep.subr.bf16.mxu1 %v637_v0  ;;  %v407_v38 = vld [vmem:[%s789_s6] ss:$0 sm:$0xff]  ;;  %p602_p4 = scmp.ne.s32.totalorder %s384_s29, %s601_s5  ;;  %p607_p6 = scmp.lt.s32.totalorder %s601_s5, %s601_s5 }
  0x53   :  { %442 = vmatmul.mubr.msk.bf16.vlgmr.msra.gmra.mrb[0].mxu0 %vm106_vm1, %v82_v5  ;;  %p608_p7 = por %p607_p6, %p606_p5 }
  0x54   :  { %481 = vmatprep.mubr.msk.bf16.mxu0 %vm638_vm0, %v637_v0  ;;  %450 = vmatpush3.bf16.msra.mxu1 %v499_v7 }
  0x55   :  { %451 = vmatprep.subr.bf16.mxu1 %v637_v0  ;;  %466 = vmatpush3.bf16.msra.mxu0 %v505_v13  ;;  %p609_p8 = pnand %p608_p7, %p602_p4 }
  0x56   :  { %467 = vmatprep.subr.bf16.mxu0 %v637_v0 }
  0x58   :  { %452 = vmatpush3.bf16.msra.mxu1 %v500_v8 }
  0x59   :  { %453 = vmatprep.subr.bf16.mxu1 %v637_v0  ;;  %468 = vmatpush3.bf16.msra.mxu0 %v506_v14 }
  0x5a   :  { %469 = vmatprep.subr.bf16.mxu0 %v637_v0 }
  0x5c   :  { %454 = vmatpush3.bf16.msra.mxu1 %v501_v9 }
  0x5d   :  { %455 = vmatprep.subr.bf16.mxu1 %v637_v0  ;;  %470 = vmatpush3.bf16.msra.mxu0 %v507_v15 }
  0x5e   :  { %471 = vmatprep.subr.bf16.mxu0 %v637_v0 }
  0x60   :  { %456 = vmatpush3.bf16.msra.mxu1 %v502_v10 }
  0x61   :  { %457 = vmatprep.subr.bf16.mxu1 %v637_v0  ;;  %472 = vmatpush3.bf16.msra.mxu0 %v508_v16 }
  0x62   :  { %473 = vmatprep.subr.bf16.mxu0 %v637_v0 }
  0x64   :  { %458 = vmatpush3.bf16.msra.mxu1 %v503_v11 }
  0x65   :  { %459 = vmatprep.subr.bf16.mxu1 %v637_v0  ;;  %474 = vmatpush3.bf16.msra.mxu0 %v509_v17 }
  0x66   :  { %475 = vmatprep.subr.bf16.mxu0 %v637_v0 }
  0x68   :  { %460 = vmatpush3.bf16.msra.mxu1 %v504_v12 }
  0x69   :  { %476 = vmatpush3.bf16.msra.mxu0 %v510_v18 }
  0x6a   :  { %477 = vmatprep.subr.bf16.mxu0 %v637_v0 }
  0x6d   :  { %478 = vmatpush3.bf16.msra.mxu0 %v511_v28 }
  0x6e   :  { %479 = vmatprep.subr.bf16.mxu0 %v637_v0 }
  0x71   :  { %480 = vmatpush3.bf16.msra.mxu0 %v512_v29 }
 0x126   :  { %v144_v20 = vpop.f32.mrb[0].mxu0 }
 0x127   :  { %v145_v21 = vadd.f32 %v394_v19, %v144_v20  ;;  %v443_v22 = vpop.f32.mrb[1].mxu0 }
 0x128   :  { %v147_v23 = vpop.f32.mrb[2].mxu0 }
 0x129   :  { %v150_v24 = vpack.c.bf16 %v145_v21, %v145_v21  ;;  %v444_v25 = vpop.f32.mrb[3].mxu0 }
 0x12b   :  { %v151_v27 = vmax.bf16 %v639_v26, %v150_v24 }
 0x12d   :  { %462 = vmatmul.mubr.bf16.vlgmr.msra.gmra.mrb[0].mxu1 %v151_v27 }
 0x200   :  { %v257_v31 = vpop.f32.mrb[0].mxu1 }
 0x201   :  { %v258_v32 = vadd.f32 %v398_v30, %v257_v31  ;;  %v463_v33 = vpop.f32.mrb[1].mxu1 }
 0x202   :  { %v260_v34 = vpop.f32.mrb[2].mxu1 }
 0x203   :  { %v263_v35 = vpack.c.bf16 %v258_v32, %v258_v32  ;;  %v464_v36 = vpop.f32.mrb[3].mxu1 }
 0x205   :  { %v264_v37 = vmax.bf16 %v639_v26, %v263_v35 }
 0x207   :  { %482 = vmatmul.mubr.bf16.vlgmr.msra.gmra.mrb[4].mxu0 %v264_v37 }
 0x2da   :  { %v370_v39 = vpop.f32.mrb[4].mxu0 }
 0x2db   :  { %v371_v40 = vadd.f32 %v407_v38, %v370_v39  ;;  %v483_v41 = vpop.f32.mrb[5].mxu0 }
 0x2dc   :  { %v373_v42 = vpop.f32.mrb[6].mxu0 }
 0x2dd   :  { %376 = vst [vmem:[#allocation10] sm:$0xff] %v371_v40  ;;  %v484_v43 = vpop.f32.mrb[7].mxu0 }
 0x2de   :  { %612 = shalt.err (!%p609_p8)
}
 0x2df   :  { %s613_s6 = scalar_lea.hbm %s790_s7, 128 }
 0x2e0   :  { %p614_p9 = scmp.ne.s32.totalorder %s790_s7, %s613_s6  ;;  %p617_p10 = scmp.lt.u32.totalorder %s613_s6, %s790_s7 }
 0x2e2   :  { %p619_p11 = pnand %p617_p10, %p614_p9 }
 0x2e4   :  { %622 = shalt.err (!%p619_p11)
}
 0x2e5   :  { %386 = dma.vmem_to_hbm [thread:$0]  %s384_s29, 128, %s790_s7, [#allocation4]  }
 0x2e6   :  { %629 = dma.done.wait [#allocation4], 128  }
 0x2e7   :  { %630 = vsyncadd [#allocation4], 4294967168 }
 0x2e8   :  { %390 = vsyncpa [#allocation3], 1 }
 0x2e9   :  { %391 = vsyncpa [#allocation6], 1 }
 0x2ea   :  { %392 = vsyncpa [#allocation9], 1 }
 0x2eb   :  { %393 = vsyncpa [#allocation4], 1 }

</bundles_post_ra>
